<compile_context>
chip_gen: v7x
topology: tpu7x:2x2x1
jax: 0.10.0
libtpu: 0.0.40
codegen_flags: <defaults>
</compile_context>

<pallas_src>
import functools

import jax
import jax.numpy as jnp
from jax.experimental import pallas as pl
from jax.experimental.pallas import tpu as pltpu


def _round_up(x, m):
    return ((x + m - 1) // m) * m


# ----------------------------------------------------------------------------
# Pallas kernel: fused 3-layer forward for all three branches
# ----------------------------------------------------------------------------
def actor_critic_kernel(num_outputs,
                        x_ref, w1_ref, b1_ref, w2_ref, b2_ref, w3_ref, b3_ref,
                        out_ref):
    x = x_ref[...]

    # Layer 1: actor|critic|choreo fc1 packed side-by-side -> [bb, 256]
    h1 = jnp.tanh(
        jnp.dot(x, w1_ref[...], preferred_element_type=jnp.float32)
        + b1_ref[...]
    )
    # Layer 2: block-diagonal (a_fc2 | c_fc2 | h_fc2) -> [bb, H2_PAD]
    h2 = jnp.tanh(
        jnp.dot(h1, w2_ref[...], preferred_element_type=jnp.float32)
        + b2_ref[...]
    )
    # dropout(p=0.1) on the actor hidden is identity in eval mode.
    # Layer 3: block-diagonal projections -> [bb, 128] packed output slab:
    #   lanes [0:num_outputs] = actor fc3 pre-tanh,
    #   lane  [num_outputs]   = critic value, lane [num_outputs+1] = choreo value.
    y = (jnp.dot(h2, w3_ref[...], preferred_element_type=jnp.float32)
         + b3_ref[...])

    # tanh only the action_mean lanes; critic/choreo values stay linear.
    lane = jax.lax.broadcasted_iota(jnp.int32, y.shape, 1)
    out_ref[...] = jnp.where(lane < num_outputs, jnp.tanh(y), y)


# ----------------------------------------------------------------------------
# Weight packing (tiny; runs as plain XLA ops inside the jitted wrapper)
# ----------------------------------------------------------------------------
def pack_params(p):
    nin = p["a_w1"].shape[0]
    hid = p["a_w2"].shape[1]
    nout = p["a_w3"].shape[1]

    H1 = 32 + 64 + 64                      # 160
    H1P = _round_up(H1, 128)               # 256
    H2 = hid + 64 + 64
    H2P = _round_up(H2, 128)
    NOUTP = _round_up(nout + 2, 128)       # 128 for small num_outputs

    f32 = jnp.float32
    # --- fused layer 1: concat along output lanes ---
    W1 = jnp.zeros((nin, H1P), f32)
    W1 = W1.at[:, 0:32].set(p["a_w1"])
    W1 = W1.at[:, 32:96].set(p["c_w1"])
    W1 = W1.at[:, 96:160].set(p["h_w1"])
    b1 = jnp.zeros((1, H1P), f32)
    b1 = b1.at[:, 0:32].set(p["a_b1"])
    b1 = b1.at[:, 32:96].set(p["c_b1"])
    b1 = b1.at[:, 96:160].set(p["h_b1"])

    # --- fused layer 2: block-diagonal ---
    W2 = jnp.zeros((H1P, H2P), f32)
    W2 = W2.at[0:32, 0:hid].set(p["a_w2"])
    W2 = W2.at[32:96, hid:hid + 64].set(p["c_w2"])
    W2 = W2.at[96:160, hid + 64:hid + 128].set(p["h_w2"])
    b2 = jnp.zeros((1, H2P), f32)
    b2 = b2.at[:, 0:hid].set(p["a_b2"])
    b2 = b2.at[:, hid:hid + 64].set(p["c_b2"])
    b2 = b2.at[:, hid + 64:hid + 128].set(p["h_b2"])

    # --- fused layer 3: block-diagonal projections into one output slab ---
    W3 = jnp.zeros((H2P, NOUTP), f32)
    W3 = W3.at[0:hid, 0:nout].set(p["a_w3"])
    W3 = W3.at[hid:hid + 64, nout:nout + 1].set(p["c_w3"])
    W3 = W3.at[hid + 64:hid + 128, nout + 1:nout + 2].set(p["h_w3"])
    b3 = jnp.zeros((1, NOUTP), f32)
    b3 = b3.at[:, 0:nout].set(p["a_b3"])
    b3 = b3.at[:, nout:nout + 1].set(p["c_b3"])
    b3 = b3.at[:, nout + 1:nout + 2].set(p["h_b3"])

    return W1, b1, W2, b2, W3, b3, NOUTP


# ----------------------------------------------------------------------------
# Wrapper
# ----------------------------------------------------------------------------
@functools.partial(jax.jit, static_argnames=("block_b",))
def actor_critic_forward(states, params, block_b=512):
    """params: dict of pre-transposed weights [in, out] and biases [1, out]."""
    B, nin = states.shape
    nout = params["a_w3"].shape[1]
    assert nout + 2 <= 128, "output packing assumes num_outputs + 2 <= 128"

    W1, b1, W2, b2, W3, b3, NOUTP = pack_params(params)

    # Batch tiling: block must be a multiple of 8 (sublane rule).
    bb = min(_round_up(B, 8), _round_up(block_b, 8))
    B_pad = _round_up(B, bb)
    if B_pad != B:
        states = jnp.pad(states, ((0, B_pad - B), (0, 0)))
    grid = (B_pad // bb,)

    const_spec = lambda shape: pl.BlockSpec(shape, lambda i: (0, 0))

    out = pl.pallas_call(
        functools.partial(actor_critic_kernel, nout),
        out_shape=jax.ShapeDtypeStruct((B_pad, NOUTP), jnp.float32),
        grid=grid,
        in_specs=[
            pl.BlockSpec((bb, nin), lambda i: (i, 0)),   # states (batch-tiled)
            const_spec(W1.shape), const_spec(b1.shape),  # weights: VMEM-resident
            const_spec(W2.shape), const_spec(b2.shape),
            const_spec(W3.shape), const_spec(b3.shape),
        ],
        out_specs=pl.BlockSpec((bb, NOUTP), lambda i: (i, 0)),
        compiler_params=pltpu.CompilerParams(
            dimension_semantics=("parallel",),
            vmem_limit_bytes=32 * 1024 * 1024,
        ),
    )(states, W1, b1, W2, b2, W3, b3)

    action_mean = out[:B, :nout]
    critic_value = out[:B, nout:nout + 1]
    choreo_value = out[:B, nout + 1:nout + 2]
    # expand_as: pure parameter broadcast -> done outside the kernel.
    action_logstd = jnp.broadcast_to(params["a_logstd"], action_mean.shape)
    return action_mean, action_logstd, critic_value, choreo_value


# ----------------------------------------------------------------------------
# Deterministic parameter init (matches __init__ shapes; orthogonal + zero bias)
# ----------------------------------------------------------------------------
def orthogonal_t(key, in_dim, out_dim, gain):
    """Orthogonally-initialized weight, pre-transposed to [in, out]."""
    rows, cols = out_dim, in_dim                      # PyTorch layout [out, in]
    a = jax.random.normal(key, (max(rows, cols), min(rows, cols)), jnp.float32)
    q, r = jnp.linalg.qr(a)
    q = q * jnp.sign(jnp.diagonal(r))
    w = q[:rows, :cols] if rows >= cols else q[:cols, :rows].T
    return (gain * w).T.astype(jnp.float32)           # -> [in, out]


def init_params(key, num_inputs, num_outputs, hid_num):
    keys = jax.random.split(key, 9)
    z = lambda n: jnp.zeros((1, n), jnp.float32)
    return {
        # actor: num_inputs -> 32 -> hid_num -> num_outputs
        "a_w1": orthogonal_t(keys[0], num_inputs, 32, 1.0), "a_b1": z(32),
        "a_w2": orthogonal_t(keys[1], 32, hid_num, 1.0),     "a_b2": z(hid_num),
        "a_w3": orthogonal_t(keys[2], hid_num, num_outputs, 0.01),
        "a_b3": z(num_outputs),
        "a_logstd": jnp.zeros((1, num_outputs), jnp.float32),
        # critic: num_inputs -> 64 -> 64 -> 1
        "c_w1": orthogonal_t(keys[3], num_inputs, 64, 1.0), "c_b1": z(64),
        "c_w2": orthogonal_t(keys[4], 64, 64, 1.0),         "c_b2": z(64),
        "c_w3": orthogonal_t(keys[5], 64, 1, 1.0),          "c_b3": z(1),
        # choreo: num_inputs -> 64 -> 64 -> 1
        "h_w1": orthogonal_t(keys[6], num_inputs, 64, 1.0), "h_b1": z(64),
        "h_w2": orthogonal_t(keys[7], 64, 64, 1.0),         "h_b2": z(64),
        "h_w3": orthogonal_t(keys[8], 64, 1, 1.0),          "h_b3": z(1),
    }


# ----------------------------------------------------------------------------
# Reference (plain JAX) for sanity check
# ----------------------------------------------------------------------------
def reference_forward(states, p):
    lin = lambda x, w, b: x @ w + b
    a = jnp.tanh(lin(states, p["a_w1"], p["a_b1"]))
    a = jnp.tanh(lin(a, p["a_w2"], p["a_b2"]))
    mean = jnp.tanh(lin(a, p["a_w3"], p["a_b3"]))
    logstd = jnp.broadcast_to(p["a_logstd"], mean.shape)
    c = jnp.tanh(lin(states, p["c_w1"], p["c_b1"]))
    c = jnp.tanh(lin(c, p["c_w2"], p["c_b2"]))
    cv = lin(c, p["c_w3"], p["c_b3"])
    h = jnp.tanh(lin(states, p["h_w1"], p["h_b1"]))
    h = jnp.tanh(lin(h, p["h_w2"], p["h_b2"]))
    hv = lin(h, p["h_w3"], p["h_b3"])
    return mean, logstd, cv, hv


if __name__ == "__main__":
    B, NUM_INPUTS, NUM_OUTPUTS, HID_NUM = 8, 16, 8, 32

    key = jax.random.PRNGKey(0)
    k_states, k_params = jax.random.split(key)
    states = jax.random.normal(k_states, (B, NUM_INPUTS), jnp.float32)
    params = init_params(k_params, NUM_INPUTS, NUM_OUTPUTS, HID_NUM)

    outs = jax.block_until_ready(actor_critic_forward(states, params))
    refs = reference_forward(states, params)
    for o, r in zip(outs, refs):
        assert o.shape == r.shape and o.dtype == r.dtype
        assert jnp.allclose(o, r, atol=2e-5, rtol=1e-5), "mismatch vs reference"

    # Also exercise a batch that is not a multiple of 8 (padding path).
    states5 = jax.random.normal(k_states, (5, NUM_INPUTS), jnp.float32)
    outs5 = jax.block_until_ready(actor_critic_forward(states5, params))
    refs5 = reference_forward(states5, params)
    for o, r in zip(outs5, refs5):
        assert o.shape == r.shape
        assert jnp.allclose(o, r, atol=2e-5, rtol=1e-5), "mismatch vs reference"

    print("KERNEL_OK")
</pallas_src>

<mosaic_0001>
module attributes {stable_mosaic.version = 11 : i64} {
  func.func @actor_critic_kernel(%arg0: i32, %arg1: memref<8x16xf32, #tpu.memory_space<vmem>>, %arg2: memref<16x256xf32, #tpu.memory_space<vmem>>, %arg3: memref<1x256xf32, #tpu.memory_space<vmem>>, %arg4: memref<256x256xf32, #tpu.memory_space<vmem>>, %arg5: memref<1x256xf32, #tpu.memory_space<vmem>>, %arg6: memref<256x128xf32, #tpu.memory_space<vmem>>, %arg7: memref<1x128xf32, #tpu.memory_space<vmem>>, %arg8: memref<8x128xf32, #tpu.memory_space<vmem>>) attributes {dimension_semantics = [#tpu.dimension_semantics<parallel>], iteration_bounds = array<i64: 1>, scalar_prefetch = 0 : i64, scratch_operands = 0 : i64, tpu.core_type = #tpu.core_type<tc>, window_params = [{transform_indices = @transform_0, window_bounds = array<i64: 8, 16>}, {pipeline_mode = #tpu.pipeline_mode<synchronous>, transform_indices = @transform_1, window_bounds = array<i64: 16, 256>}, {pipeline_mode = #tpu.pipeline_mode<synchronous>, transform_indices = @transform_2, window_bounds = array<i64: 1, 256>}, {pipeline_mode = #tpu.pipeline_mode<synchronous>, transform_indices = @transform_3, window_bounds = array<i64: 256, 256>}, {pipeline_mode = #tpu.pipeline_mode<synchronous>, transform_indices = @transform_4, window_bounds = array<i64: 1, 256>}, {pipeline_mode = #tpu.pipeline_mode<synchronous>, transform_indices = @transform_5, window_bounds = array<i64: 256, 128>}, {pipeline_mode = #tpu.pipeline_mode<synchronous>, transform_indices = @transform_6, window_bounds = array<i64: 1, 128>}, {transform_indices = @transform_7, window_bounds = array<i64: 8, 128>}]} {
    %c0 = arith.constant 0 : index
    %c0_0 = arith.constant 0 : index
    %0 = vector.load %arg1[%c0, %c0_0] : memref<8x16xf32, #tpu.memory_space<vmem>>, vector<8x16xf32>
    %c0_1 = arith.constant 0 : index
    %c0_2 = arith.constant 0 : index
    %1 = vector.load %arg2[%c0_1, %c0_2] : memref<16x256xf32, #tpu.memory_space<vmem>>, vector<16x256xf32>
    %cst = arith.constant dense<0.000000e+00> : vector<8x256xf32>
    %2 = tpu.matmul %0, %1, %cst {dimension_numbers = #tpu.dot_dimension_numbers<[1], [0], [0], [1], [0, 0, 1, 1], [], []>} : vector<8x16xf32>, vector<16x256xf32>, vector<8x256xf32> -> vector<8x256xf32>
    %c0_3 = arith.constant 0 : index
    %c0_4 = arith.constant 0 : index
    %3 = vector.load %arg3[%c0_3, %c0_4] : memref<1x256xf32, #tpu.memory_space<vmem>>, vector<1x256xf32>
    %4 = vector.broadcast %3 : vector<1x256xf32> to vector<8x256xf32>
    %5 = arith.addf %2, %4 : vector<8x256xf32>
    %6 = math.tanh %5 : vector<8x256xf32>
    %c0_5 = arith.constant 0 : index
    %c0_6 = arith.constant 0 : index
    %7 = vector.load %arg4[%c0_5, %c0_6] : memref<256x256xf32, #tpu.memory_space<vmem>>, vector<256x256xf32>
    %cst_7 = arith.constant dense<0.000000e+00> : vector<8x256xf32>
    %8 = tpu.matmul %6, %7, %cst_7 {dimension_numbers = #tpu.dot_dimension_numbers<[1], [0], [0], [1], [0, 0, 1, 1], [], []>} : vector<8x256xf32>, vector<256x256xf32>, vector<8x256xf32> -> vector<8x256xf32>
    %c0_8 = arith.constant 0 : index
    %c0_9 = arith.constant 0 : index
    %9 = vector.load %arg5[%c0_8, %c0_9] : memref<1x256xf32, #tpu.memory_space<vmem>>, vector<1x256xf32>
    %10 = vector.broadcast %9 : vector<1x256xf32> to vector<8x256xf32>
    %11 = arith.addf %8, %10 : vector<8x256xf32>
    %12 = math.tanh %11 : vector<8x256xf32>
    %c0_10 = arith.constant 0 : index
    %c0_11 = arith.constant 0 : index
    %13 = vector.load %arg6[%c0_10, %c0_11] : memref<256x128xf32, #tpu.memory_space<vmem>>, vector<256x128xf32>
    %cst_12 = arith.constant dense<0.000000e+00> : vector<8x128xf32>
    %14 = tpu.matmul %12, %13, %cst_12 {dimension_numbers = #tpu.dot_dimension_numbers<[1], [0], [0], [1], [0, 0, 1, 1], [], []>} : vector<8x256xf32>, vector<256x128xf32>, vector<8x128xf32> -> vector<8x128xf32>
    %c0_13 = arith.constant 0 : index
    %c0_14 = arith.constant 0 : index
    %15 = vector.load %arg7[%c0_13, %c0_14] : memref<1x128xf32, #tpu.memory_space<vmem>>, vector<1x128xf32>
    %16 = vector.broadcast %15 : vector<1x128xf32> to vector<8x128xf32>
    %17 = arith.addf %14, %16 : vector<8x128xf32>
    %18 = tpu.iota {dimensions = array<i32: 1>} : vector<8x128xi32>
    %c8_i32 = arith.constant 8 : i32
    %19 = vector.broadcast %c8_i32 : i32 to vector<8x128xi32>
    %20 = arith.cmpi slt, %18, %19 : vector<8x128xi32>
    %21 = math.tanh %17 : vector<8x128xf32>
    %22 = arith.select %20, %21, %17 : vector<8x128xi1>, vector<8x128xf32>
    %c0_15 = arith.constant 0 : index
    %c0_16 = arith.constant 0 : index
    %23 = vector.load %arg8[%c0_15, %c0_16] : memref<8x128xf32, #tpu.memory_space<vmem>>, vector<8x128xf32>
    tpu.vector_store %arg8[%c0_15, %c0_16], %22 {strides = array<i32>} : memref<8x128xf32, #tpu.memory_space<vmem>>, vector<8x128xf32>,
    return
  }
  func.func @transform_0(%arg0: i32) -> (i32, i32) {
    %c0_i32 = arith.constant 0 : i32
    %c0_i32_0 = arith.constant 0 : i32
    return %arg0, %c0_i32 : i32, i32
  }
  func.func @transform_1(%arg0: i32) -> (i32, i32) {
    %c0_i32 = arith.constant 0 : i32
    %c0_i32_0 = arith.constant 0 : i32
    %c0_i32_1 = arith.constant 0 : i32
    return %c0_i32, %c0_i32_0 : i32, i32
  }
  func.func @transform_2(%arg0: i32) -> (i32, i32) {
    %c0_i32 = arith.constant 0 : i32
    %c0_i32_0 = arith.constant 0 : i32
    %c0_i32_1 = arith.constant 0 : i32
    return %c0_i32, %c0_i32_0 : i32, i32
  }
  func.func @transform_3(%arg0: i32) -> (i32, i32) {
    %c0_i32 = arith.constant 0 : i32
    %c0_i32_0 = arith.constant 0 : i32
    %c0_i32_1 = arith.constant 0 : i32
    return %c0_i32, %c0_i32_0 : i32, i32
  }
  func.func @transform_4(%arg0: i32) -> (i32, i32) {
    %c0_i32 = arith.constant 0 : i32
    %c0_i32_0 = arith.constant 0 : i32
    %c0_i32_1 = arith.constant 0 : i32
    return %c0_i32, %c0_i32_0 : i32, i32
  }
  func.func @transform_5(%arg0: i32) -> (i32, i32) {
    %c0_i32 = arith.constant 0 : i32
    %c0_i32_0 = arith.constant 0 : i32
    %c0_i32_1 = arith.constant 0 : i32
    return %c0_i32, %c0_i32_0 : i32, i32
  }
  func.func @transform_6(%arg0: i32) -> (i32, i32) {
    %c0_i32 = arith.constant 0 : i32
    %c0_i32_0 = arith.constant 0 : i32
    %c0_i32_1 = arith.constant 0 : i32
    return %c0_i32, %c0_i32_0 : i32, i32
  }
  func.func @transform_7(%arg0: i32) -> (i32, i32) {
    %c0_i32 = arith.constant 0 : i32
    %c0_i32_0 = arith.constant 0 : i32
    return %arg0, %c0_i32 : i32, i32
  }
}

</mosaic_0001>

<bundles_post_ra>
// kernel: actor_critic_forward.1
= control target key start
LH: loop header
LB: loop body
LE: loop exit
PB: predicated region body
PF: predicated region fallthrough
CT: control target
= control target key end

     0   :  { %v536_v3 = vmov 0.0   ;;  %vm43_vm0 = vcmask 130048   ;;  %s894_s1 = inlined_call_operand.vmem [shape: f32[16,256], index: 1, kind: input, shape index: {}]   ;;  %s895_s0 = inlined_call_operand.vmem [shape: f32[8,16], index: 0, kind: input, shape index: {}]   ;;  %s896_s3 = inlined_call_operand.vmem [shape: f32[256,256], index: 3, kind: input, shape index: {}]   ;;  %s897_s5 = inlined_call_operand.vmem [shape: f32[256,128], index: 5, kind: input, shape index: {}]   ;;  %s898_s2 = inlined_call_operand.vmem [shape: f32[1,256], index: 2, kind: input, shape index: {}]   ;;  %s899_s4 = inlined_call_operand.vmem [shape: f32[1,256], index: 4, kind: input, shape index: {}]   ;;  %s900_s6 = inlined_call_operand.vmem [shape: f32[1,128], index: 6, kind: input, shape index: {}]   ;;  %s901_s7 = inlined_call_operand.vmem [shape: f32[8,128], index: 7, kind: output, shape index: {}]  }
   0x1   :  { %v28_v0 = vld [vmem:[%s894_s1 + $0x8] sm:$0xff]  ;;  %v30_v1 = vld [vmem:[%s894_s1 + $0x18] sm:$0xff]  ;;  %v27_v2 = vld [vmem:[%s894_s1] sm:$0xff]  ;;  %111 = vmatprep.mubr.f32.mxu0 %v536_v3 }
   0x2   :  { %v425_v4 = vpack.c.bf16 %v30_v1, %v28_v0  ;;  %v29_v5 = vld [vmem:[%s894_s1 + $0x10] sm:$0xff]  ;;  %v121_v6 = vld [vmem:[%s896_s3 + $0x8] sm:$0xff]  ;;  %v26_v8 = vld [vmem:[%s895_s0] sm:$0xff] }
   0x3   :  { %v427_v7 = vpack.c.bf16 %v29_v5, %v27_v2  ;;  %v123_v9 = vld [vmem:[%s896_s3 + $0x18] sm:$0xff]  ;;  %v120_v10 = vld [vmem:[%s896_s3] sm:$0xff]  ;;  %v122_v11 = vld [vmem:[%s896_s3 + $0x10] sm:$0xff] }
   0x4   :  { %426 = vmatprep.subr.bf16.mxu0 %v425_v4  ;;  %v429_v12 = vpack.c.bf16 %v123_v9, %v121_v6  ;;  %v431_v13 = vpack.c.bf16 %v122_v11, %v120_v10  ;;  %v125_v14 = vld [vmem:[%s896_s3 + $0x28] sm:$0xff]  ;;  %v127_v15 = vld [vmem:[%s896_s3 + $0x38] sm:$0xff]  ;;  %v124_v16 = vld [vmem:[%s896_s3 + $0x20] sm:$0xff] }
   0x5   :  { %428 = vmatpush1.bf16.msra.mxu0 %v427_v7  ;;  %v433_v17 = vpack.c.bf16 %v127_v15, %v125_v14  ;;  %v126_v18 = vld [vmem:[%s896_s3 + $0x30] sm:$0xff]  ;;  %v129_v19 = vld [vmem:[%s896_s3 + $0x48] sm:$0xff]  ;;  %v131_v20 = vld [vmem:[%s896_s3 + $0x58] sm:$0xff] }
   0x6   :  { %430 = vmatprep.subr.bf16.mxu1 %v429_v12  ;;  %v435_v21 = vpack.c.bf16 %v126_v18, %v124_v16  ;;  %v437_v22 = vpack.c.bf16 %v131_v20, %v129_v19  ;;  %v128_v23 = vld [vmem:[%s896_s3 + $0x40] sm:$0xff]  ;;  %v130_v24 = vld [vmem:[%s896_s3 + $0x50] sm:$0xff]  ;;  %v133_v25 = vld [vmem:[%s896_s3 + $0x68] sm:$0xff] }
   0x7   :  { %432 = vmatpush1.bf16.msra.mxu1 %v431_v13  ;;  %v135_v26 = vld [vmem:[%s896_s3 + $0x78] sm:$0xff]  ;;  %v439_v27 = vpack.c.bf16 %v130_v24, %v128_v23  ;;  %v132_v29 = vld [vmem:[%s896_s3 + $0x60] sm:$0xff]  ;;  %v134_v30 = vld [vmem:[%s896_s3 + $0x70] sm:$0xff] }
   0x8   :  { %388 = vmatmul.mubr.msk.f32.vlgmr.msra.gmra.mrb[0].mxu0 %vm43_vm0, %v26_v8  ;;  %434 = vmatprep.subr.bf16.mxu1 %v433_v17  ;;  %v441_v28 = vpack.c.bf16 %v135_v26, %v133_v25  ;;  %v137_v31 = vld [vmem:[%s896_s3 + $0x88] sm:$0xff]  ;;  %v139_v32 = vld [vmem:[%s896_s3 + $0x98] sm:$0xff]  ;;  %v443_v33 = vpack.c.bf16 %v134_v30, %v132_v29  ;;  %v136_v35 = vld [vmem:[%s896_s3 + $0x80] sm:$0xff] }
   0x9   :  { %v445_v34 = vpack.c.bf16 %v139_v32, %v137_v31  ;;  %v138_v36 = vld [vmem:[%s896_s3 + $0x90] sm:$0xff]  ;;  %v141_v37 = vld [vmem:[%s896_s3 + $0xa8] sm:$0xff]  ;;  %v143_v38 = vld [vmem:[%s896_s3 + $0xb8] sm:$0xff] }
   0xa   :  { %v447_v39 = vpack.c.bf16 %v138_v36, %v136_v35  ;;  %v449_v40 = vpack.c.bf16 %v143_v38, %v141_v37  ;;  %v140_v41 = vld [vmem:[%s896_s3 + $0xa0] sm:$0xff]  ;;  %v142_v42 = vld [vmem:[%s896_s3 + $0xb0] sm:$0xff]  ;;  %v145_v43 = vld [vmem:[%s896_s3 + $0xc8] sm:$0xff] }
   0xb   :  { %436 = vmatpush1.bf16.msra.mxu1 %v435_v21  ;;  %v147_v44 = vld [vmem:[%s896_s3 + $0xd8] sm:$0xff]  ;;  %v451_v45 = vpack.c.bf16 %v142_v42, %v140_v41  ;;  %v144_v47 = vld [vmem:[%s896_s3 + $0xc0] sm:$0xff]  ;;  %v146_v48 = vld [vmem:[%s896_s3 + $0xd0] sm:$0xff] }
   0xc   :  { %438 = vmatprep.subr.bf16.mxu1 %v437_v22  ;;  %v453_v46 = vpack.c.bf16 %v147_v44, %v145_v43  ;;  %v149_v49 = vld [vmem:[%s896_s3 + $0xe8] sm:$0xff]  ;;  %v151_v50 = vld [vmem:[%s896_s3 + $0xf8] sm:$0xff]  ;;  %v455_v51 = vpack.c.bf16 %v146_v48, %v144_v47  ;;  %v148_v53 = vld [vmem:[%s896_s3 + $0xe0] sm:$0xff] }
   0xd   :  { %v457_v52 = vpack.c.bf16 %v151_v50, %v149_v49  ;;  %v150_v54 = vld [vmem:[%s896_s3 + $0xf0] sm:$0xff]  ;;  %v153_v55 = vld [vmem:[%s896_s3 + $0x108] sm:$0xff]  ;;  %v155_v56 = vld [vmem:[%s896_s3 + $0x118] sm:$0xff] }
   0xe   :  { %v459_v57 = vpack.c.bf16 %v150_v54, %v148_v53  ;;  %v461_v58 = vpack.c.bf16 %v155_v56, %v153_v55  ;;  %v152_v59 = vld [vmem:[%s896_s3 + $0x100] sm:$0xff]  ;;  %v154_v60 = vld [vmem:[%s896_s3 + $0x110] sm:$0xff]  ;;  %v157_v61 = vld [vmem:[%s896_s3 + $0x128] sm:$0xff] }
   0xf   :  { %440 = vmatpush1.bf16.msra.mxu1 %v439_v27  ;;  %v159_v62 = vld [vmem:[%s896_s3 + $0x138] sm:$0xff]  ;;  %v463_v63 = vpack.c.bf16 %v154_v60, %v152_v59  ;;  %v156_v1 = vld [vmem:[%s896_s3 + $0x120] sm:$0xff]  ;;  %v158_v2 = vld [vmem:[%s896_s3 + $0x130] sm:$0xff] }
  0x10   :  { %442 = vmatprep.subr.bf16.mxu1 %v441_v28  ;;  %v465_v0 = vpack.c.bf16 %v159_v62, %v157_v61  ;;  %v161_v3 = vld [vmem:[%s896_s3 + $0x148] sm:$0xff]  ;;  %v163_v4 = vld [vmem:[%s896_s3 + $0x158] sm:$0xff]  ;;  %v467_v5 = vpack.c.bf16 %v158_v2, %v156_v1  ;;  %v160_v7 = vld [vmem:[%s896_s3 + $0x140] sm:$0xff] }
  0x11   :  { %v469_v6 = vpack.c.bf16 %v163_v4, %v161_v3  ;;  %v162_v8 = vld [vmem:[%s896_s3 + $0x150] sm:$0xff]  ;;  %v165_v9 = vld [vmem:[%s896_s3 + $0x168] sm:$0xff]  ;;  %v167_v10 = vld [vmem:[%s896_s3 + $0x178] sm:$0xff] }
  0x12   :  { %v471_v11 = vpack.c.bf16 %v162_v8, %v160_v7  ;;  %v473_v12 = vpack.c.bf16 %v167_v10, %v165_v9  ;;  %v164_v13 = vld [vmem:[%s896_s3 + $0x160] sm:$0xff]  ;;  %v166_v14 = vld [vmem:[%s896_s3 + $0x170] sm:$0xff]  ;;  %v169_v16 = vld [vmem:[%s896_s3 + $0x188] sm:$0xff] }
  0x13   :  { %444 = vmatpush1.bf16.msra.mxu1 %v443_v33  ;;  %v475_v15 = vpack.c.bf16 %v166_v14, %v164_v13  ;;  %v171_v17 = vld [vmem:[%s896_s3 + $0x198] sm:$0xff]  ;;  %v168_v19 = vld [vmem:[%s896_s3 + $0x180] sm:$0xff]  ;;  %v170_v20 = vld [vmem:[%s896_s3 + $0x190] sm:$0xff] }
  0x14   :  { %446 = vmatprep.subr.bf16.mxu1 %v445_v34  ;;  %v477_v18 = vpack.c.bf16 %v171_v17, %v169_v16  ;;  %v479_v21 = vpack.c.bf16 %v170_v20, %v168_v19  ;;  %v173_v22 = vld [vmem:[%s896_s3 + $0x1a8] sm:$0xff]  ;;  %v175_v23 = vld [vmem:[%s896_s3 + $0x1b8] sm:$0xff]  ;;  %v172_v25 = vld [vmem:[%s896_s3 + $0x1a0] sm:$0xff] }
  0x15   :  { %v481_v24 = vpack.c.bf16 %v175_v23, %v173_v22  ;;  %v174_v26 = vld [vmem:[%s896_s3 + $0x1b0] sm:$0xff]  ;;  %v177_v28 = vld [vmem:[%s896_s3 + $0x1c8] sm:$0xff]  ;;  %v179_v29 = vld [vmem:[%s896_s3 + $0x1d8] sm:$0xff] }
  0x16   :  { %v483_v27 = vpack.c.bf16 %v174_v26, %v172_v25  ;;  %v176_v30 = vld [vmem:[%s896_s3 + $0x1c0] sm:$0xff]  ;;  %v485_v31 = vpack.c.bf16 %v179_v29, %v177_v28  ;;  %v178_v32 = vld [vmem:[%s896_s3 + $0x1d0] sm:$0xff]  ;;  %v181_v33 = vld [vmem:[%s896_s3 + $0x1e8] sm:$0xff] }
  0x17   :  { %448 = vmatpush1.bf16.msra.mxu1 %v447_v39  ;;  %v183_v34 = vld [vmem:[%s896_s3 + $0x1f8] sm:$0xff]  ;;  %v487_v35 = vpack.c.bf16 %v178_v32, %v176_v30  ;;  %v180_v37 = vld [vmem:[%s896_s3 + $0x1e0] sm:$0xff]  ;;  %v182_v38 = vld [vmem:[%s896_s3 + $0x1f0] sm:$0xff] }
  0x18   :  { %450 = vmatprep.subr.bf16.mxu1 %v449_v40  ;;  %v489_v36 = vpack.c.bf16 %v183_v34, %v181_v33  ;;  %v491_v39 = vpack.c.bf16 %v182_v38, %v180_v37  ;;  %v285_v40 = vld [vmem:[%s897_s5 + $0x80] sm:$0xff]  ;;  %v286_v41 = vld [vmem:[%s897_s5 + $0x88] sm:$0xff]  ;;  %v271_v49 = vld [vmem:[%s897_s5 + $0x10] sm:$0xff] }
  0x19   :  { %v269_v42 = vld [vmem:[%s897_s5] sm:$0xff]  ;;  %v493_v43 = vpack.c.bf16 %v286_v41, %v285_v40  ;;  %v270_v44 = vld [vmem:[%s897_s5 + $0x8] sm:$0xff]  ;;  %v272_v50 = vld [vmem:[%s897_s5 + $0x18] sm:$0xff] }
  0x1a   :  { %v495_v47 = vpack.c.bf16 %v270_v44, %v269_v42  ;;  %v499_v53 = vpack.c.bf16 %v272_v50, %v271_v49  ;;  %v273_v55 = vld [vmem:[%s897_s5 + $0x20] sm:$0xff]  ;;  %v274_v56 = vld [vmem:[%s897_s5 + $0x28] sm:$0xff]  ;;  %v275_v61 = vld [vmem:[%s897_s5 + $0x30] sm:$0xff] }
  0x1b   :  { %452 = vmatpush1.bf16.msra.mxu1 %v451_v45  ;;  %v287_v45 = vld [vmem:[%s897_s5 + $0x90] sm:$0xff]  ;;  %494 = vmatprep.subr.bf16.mxu0 %v493_v43  ;;  %v503_v59 = vpack.c.bf16 %v274_v56, %v273_v55  ;;  %v276_v62 = vld [vmem:[%s897_s5 + $0x38] sm:$0xff]  ;;  %v31_v3 = vld [vmem:[%s898_s2] sm:$0x3] }
  0x1c   :  { %454 = vmatprep.subr.bf16.mxu1 %v453_v46  ;;  %v288_v46 = vld [vmem:[%s897_s5 + $0x98] sm:$0xff]  ;;  %496 = vmatpush3.bf16.msra.mxu0 %v495_v47  ;;  %v293_v13 = vld [vmem:[%s897_s5 + $0xc0] sm:$0xff]  ;;  %v294_v14 = vld [vmem:[%s897_s5 + $0xc8] sm:$0xff] }
  0x1d   :  { %v497_v48 = vpack.c.bf16 %v288_v46, %v287_v45  ;;  %v277_v16 = vld [vmem:[%s897_s5 + $0x40] sm:$0xff]  ;;  %v278_v17 = vld [vmem:[%s897_s5 + $0x48] sm:$0xff]  ;;  %v295_v19 = vld [vmem:[%s897_s5 + $0xd0] sm:$0xff] }
  0x1e   :  { %v296_v20 = vld [vmem:[%s897_s5 + $0xd8] sm:$0xff]  ;;  %v279_v22 = vld [vmem:[%s897_s5 + $0x50] sm:$0xff]  ;;  %v297_v25 = vld [vmem:[%s897_s5 + $0xe0] sm:$0xff] }
  0x1f   :  { %456 = vmatpush1.bf16.msra.mxu1 %v455_v51  ;;  %v289_v51 = vld [vmem:[%s897_s5 + $0xa0] sm:$0xff]  ;;  %498 = vmatprep.subr.bf16.mxu0 %v497_v48  ;;  %v280_v23 = vld [vmem:[%s897_s5 + $0x58] sm:$0xff]  ;;  %v298_v26 = vld [vmem:[%s897_s5 + $0xe8] sm:$0xff] }
  0x20   :  { %458 = vmatprep.subr.bf16.mxu1 %v457_v52  ;;  %v290_v52 = vld [vmem:[%s897_s5 + $0xa8] sm:$0xff]  ;;  %500 = vmatpush3.bf16.msra.mxu0 %v499_v53  ;;  %v517_v28 = vpack.c.bf16 %v298_v26, %v297_v25  ;;  %v299_v30 = vld [vmem:[%s897_s5 + $0xf0] sm:$0xff]  ;;  %v184_v37 = vld [vmem:[%s899_s4] sm:$0x3] }
  0x21   :  { %v501_v54 = vpack.c.bf16 %v290_v52, %v289_v51  ;;  %v282_v29 = vld [vmem:[%s897_s5 + $0x68] sm:$0xff]  ;;  %v283_v34 = vld [vmem:[%s897_s5 + $0x70] sm:$0xff]  ;;  %v389_v47 = vld [vmem:[%s900_s6] ss:$0 sm:$0xff] }
  0x23   :  { %460 = vmatpush1.bf16.msra.mxu1 %v459_v57  ;;  %v291_v57 = vld [vmem:[%s897_s5 + $0xb0] sm:$0xff]  ;;  %502 = vmatprep.subr.bf16.mxu0 %v501_v54 }
  0x24   :  { %462 = vmatprep.subr.bf16.mxu1 %v461_v58  ;;  %v292_v58 = vld [vmem:[%s897_s5 + $0xb8] sm:$0xff]  ;;  %504 = vmatpush3.bf16.msra.mxu0 %v503_v59 }
  0x25   :  { %v505_v60 = vpack.c.bf16 %v292_v58, %v291_v57 }
  0x27   :  { %464 = vmatpush1.bf16.msra.mxu1 %v463_v63  ;;  %v507_v63 = vpack.c.bf16 %v276_v62, %v275_v61  ;;  %506 = vmatprep.subr.bf16.mxu0 %v505_v60 }
  0x28   :  { %466 = vmatprep.subr.bf16.mxu1 %v465_v0  ;;  %v33_v0 = vlaneseq }
  0x29   :  { %508 = vmatpush3.bf16.msra.mxu0 %v507_v63 }
  0x2a   :  { %v34_v1 = vshrl.u32 %v33_v0, 7  ;;  %v379_v51 = vand.u32 127, %v33_v0 }
  0x2b   :  { %468 = vmatpush1.bf16.msra.mxu1 %v467_v5 }
  0x2c   :  { %470 = vmatprep.subr.bf16.mxu1 %v469_v6  ;;  %v35_v2 = vsub.s32 0, %v34_v1  ;;  %v39_v4 = vsub.s32 1, %v34_v1  ;;  %vm380_vm1 = vcmp.lt.s32.totalorder %v379_v51, 8 }
  0x2e   :  { %v36_v5 = vrot.slane %v31_v3, %v35_v2  ;;  %v40_v6 = vrot.slane %v31_v3, %v39_v4  ;;  %v189_v38 = vrot.slane %v184_v37, %v35_v2 }
  0x2f   :  { %472 = vmatpush1.bf16.msra.mxu1 %v471_v11 }
  0x30   :  { %474 = vmatprep.subr.bf16.mxu1 %v473_v12 }
  0x33   :  { %476 = vmatpush1.bf16.msra.mxu1 %v475_v15  ;;  %v509_v15 = vpack.c.bf16 %v294_v14, %v293_v13 }
  0x34   :  { %478 = vmatprep.subr.bf16.mxu1 %v477_v18  ;;  %v511_v18 = vpack.c.bf16 %v278_v17, %v277_v16 }
  0x35   :  { %510 = vmatprep.subr.bf16.mxu0 %v509_v15 }
  0x36   :  { %512 = vmatpush3.bf16.msra.mxu0 %v511_v18 }
  0x37   :  { %480 = vmatpush1.bf16.msra.mxu1 %v479_v21  ;;  %v513_v21 = vpack.c.bf16 %v296_v20, %v295_v19 }
  0x38   :  { %482 = vmatprep.subr.bf16.mxu1 %v481_v24  ;;  %v515_v24 = vpack.c.bf16 %v280_v23, %v279_v22 }
  0x39   :  { %514 = vmatprep.subr.bf16.mxu0 %v513_v21 }
  0x3a   :  { %516 = vmatpush3.bf16.msra.mxu0 %v515_v24 }
  0x3b   :  { %484 = vmatpush1.bf16.msra.mxu1 %v483_v27  ;;  %v281_v27 = vld [vmem:[%s897_s5 + $0x60] sm:$0xff]  ;;  %518 = vmatprep.subr.bf16.mxu0 %v517_v28 }
  0x3c   :  { %486 = vmatprep.subr.bf16.mxu1 %v485_v31  ;;  %v300_v31 = vld [vmem:[%s897_s5 + $0xf8] sm:$0xff]  ;;  %v519_v32 = vpack.c.bf16 %v282_v29, %v281_v27 }
  0x3d   :  { %v521_v33 = vpack.c.bf16 %v300_v31, %v299_v30 }
  0x3e   :  { %520 = vmatpush3.bf16.msra.mxu0 %v519_v32 }
  0x3f   :  { %488 = vmatpush1.bf16.msra.mxu1 %v487_v35  ;;  %v284_v35 = vld [vmem:[%s897_s5 + $0x78] sm:$0xff]  ;;  %522 = vmatprep.subr.bf16.mxu0 %v521_v33 }
  0x40   :  { %490 = vmatprep.subr.bf16.mxu1 %v489_v36  ;;  %v523_v36 = vpack.c.bf16 %v284_v35, %v283_v34 }
  0x42   :  { %524 = vmatpush3.bf16.msra.mxu0 %v523_v36 }
  0x43   :  { %492 = vmatpush1.bf16.msra.mxu1 %v491_v39  ;;  %v193_v39 = vrot.slane %v184_v37, %v39_v4 }
  0xdb   :  { %v113_v7 = vpop.f32.mrb[0].mxu0 }
  0xdc   :  { %v114_v8 = vadd.f32 %v113_v7, %v36_v5  ;;  %v115_v9 = vpop.f32.mrb[1].mxu0 }
  0xdd   :  { %v116_v10 = vadd.f32 %v115_v9, %v40_v6 }
  0xdf   :  { %526 = vtanh.f32 %v116_v10 }
  0xe0   :  { %528 = vtanh.f32 %v114_v8 }
  0xe9   :  { %v527_v11 = vpop.eup %526 }
  0xea   :  { %v529_v12 = vpop.eup %528  ;;  %260 = vmatprep.mubr.f32.mxu1 %v527_v11 }
  0xeb   :  { %261 = vmatmul.mubr.f32.vlgmr.msra.gmra.mrb[0].mxu1 %v529_v12 }
 0x1be   :  { %v262_v40 = vpop.f32.mrb[0].mxu1 }
 0x1bf   :  { %v263_v41 = vadd.f32 %v262_v40, %v189_v38  ;;  %v264_v42 = vpop.f32.mrb[1].mxu1 }
 0x1c0   :  { %v265_v43 = vadd.f32 %v264_v42, %v193_v39 }
 0x1c2   :  { %530 = vtanh.f32 %v265_v43 }
 0x1c3   :  { %532 = vtanh.f32 %v263_v41 }
 0x1cc   :  { %v531_v44 = vpop.eup %530 }
 0x1cd   :  { %v533_v45 = vpop.eup %532  ;;  %372 = vmatprep.mubr.f32.mxu0 %v531_v44 }
 0x1ce   :  { %373 = vmatmul.mubr.f32.vlgmr.msra.gmra.mrb[2].mxu0 %v533_v45 }
 0x2a1   :  { %v422_v46 = vpop.f32.mrb[2].mxu0 }
 0x2a2   :  { %v423_v48 = vpop.f32.mrb[3].mxu0 }
 0x2a3   :  { %v424_v49 = vadd.f32 %v423_v48, %v422_v46 }
 0x2a5   :  { %v375_v50 = vadd.f32 %v424_v49, %v389_v47 }
 0x2a7   :  { %534 = vtanh.f32 %v375_v50 }
 0x2b1   :  { %v535_v52 = vpop.eup %534 }
 0x2b2   :  { %v382_v53 = vsel %vm380_vm1, %v535_v52, %v375_v50 }
 0x2b3   :  { %383 = vst [vmem:[%s901_s7] sm:$0xff] %v382_v53 }

</bundles_post_ra>
